<compile_context>
chip_gen: v6e
topology: v6e:2x2x1
jax: 0.10.0
libtpu: 0.0.40
codegen_flags: <defaults>
</compile_context>

<pallas_src>
import jax
import jax.numpy as jnp
import numpy as np
from jax import lax
from jax.experimental import pallas as pl
from jax.experimental.pallas import tpu as pltpu


# ----------------------------------------------------------------------------
# Fused Pallas kernel: conv1 + bn1 + relu -> conv2 + bn2 -> +residual -> relu
# ----------------------------------------------------------------------------
def _basic_block_kernel(x_ref, b1_ref, s1_ref, t1_ref, b2_ref, s2_ref, t2_ref,
                        o_ref):
    """One image per grid step.

    x_ref : (1, H, W*Cin)        image in channels-last "row slab" layout
    b1_ref: (3, W*Cin, W*Cmid)   block-banded conv1 weights (one per dy tap)
    b2_ref: (3, W*Cmid, W*Cout)  block-banded conv2 weights
    s*/t* : (1, W*C)             folded BN scale / shift, tiled along W
    o_ref : (1, H, W*Cout)
    """
    x = x_ref[0].astype(jnp.float32)                      # (H, W*Cin)
    H = x.shape[0]

    def conv3x3(inp, b_ref):
        # out[h] = inp[h-1] @ B0 + inp[h] @ B1 + inp[h+1] @ B2
        # (H zero-padding handled by the row shifts below; W zero-padding is
        #  already baked into the banded B matrices.)
        y0 = jnp.dot(inp, b_ref[0], preferred_element_type=jnp.float32)
        y1 = jnp.dot(inp, b_ref[1], preferred_element_type=jnp.float32)
        y2 = jnp.dot(inp, b_ref[2], preferred_element_type=jnp.float32)
        zrow = jnp.zeros_like(y1[:1])
        up = jnp.concatenate([zrow, y0[:H - 1]], axis=0)   # y0 shifted down 1 row
        dn = jnp.concatenate([y2[1:], zrow], axis=0)       # y2 shifted up 1 row
        return up + y1 + dn

    h1 = conv3x3(x, b1_ref)
    h1 = jnp.maximum(h1 * s1_ref[...] + t1_ref[...], 0.0)  # bn1 + relu
    h2 = conv3x3(h1, b2_ref)
    h2 = h2 * s2_ref[...] + t2_ref[...]                    # bn2
    out = jnp.maximum(h2 + x, 0.0)                         # + residual, relu
    o_ref[0] = out.astype(o_ref.dtype)


# ----------------------------------------------------------------------------
# Weight preprocessing: fold the dx taps + width padding into banded matrices
# ----------------------------------------------------------------------------
def _banded_weights(w_hwio, W):
    """(3,3,Cin,Cout) HWIO weights -> (3, W*Cin, W*Cout) float32 such that
    B[dy][wi*Cin + ci, wo*Cout + co] = w[dy, wi-wo+1, ci, co] if |wi-wo| <= 1
    else 0.  The zero band edges implement the padding=1 behaviour along W."""
    Cin, Cout = int(w_hwio.shape[2]), int(w_hwio.shape[3])
    bands = []
    for dy in range(3):
        b = jnp.zeros((W, Cin, W, Cout), jnp.float32)
        for dx in range(3):
            p = np.zeros((W, W), np.float32)
            for wo in range(W):
                wi = wo + dx - 1
                if 0 <= wi < W:
                    p[wi, wo] = 1.0
            b = b + jnp.einsum("ab,cd->acbd", jnp.asarray(p),
                               w_hwio[dy, dx].astype(jnp.float32))
        bands.append(b.reshape(W * Cin, W * Cout))
    return jnp.stack(bands, axis=0)


# ----------------------------------------------------------------------------
# Wrappers
# ----------------------------------------------------------------------------
def basic_block_forward_nhwc(x_nhwc, params):
    """BasicBlock forward on NHWC activations (single fused pallas_call)."""
    # TODO(synk): stride>1 / downsample branch not implemented (default ctor has
    # stride=1, downsample=None, which requires inplanes == planes).
    # TODO(synk): for large H*W / C>=64, add an H-tile grid axis with a 1-row
    # halo instead of one whole image per grid step.
    N, H, W, Cin = x_nhwc.shape
    w1, w2 = params["w1"], params["w2"]                    # HWIO (3,3,Ci,Co)
    Cmid, Cout = int(w1.shape[-1]), int(w2.shape[-1])
    assert Cin == Cout, "identity residual requires inplanes == planes"

    b1 = _banded_weights(w1, W)                            # (3, W*Cin, W*Cmid)
    b2 = _banded_weights(w2, W)                            # (3, W*Cmid, W*Cout)
    s1 = jnp.tile(params["scale1"].astype(jnp.float32), W).reshape(1, W * Cmid)
    t1 = jnp.tile(params["shift1"].astype(jnp.float32), W).reshape(1, W * Cmid)
    s2 = jnp.tile(params["scale2"].astype(jnp.float32), W).reshape(1, W * Cout)
    t2 = jnp.tile(params["shift2"].astype(jnp.float32), W).reshape(1, W * Cout)

    x_rows = x_nhwc.reshape(N, H, W * Cin)                 # free trailing-dim merge

    out_rows = pl.pallas_call(
        _basic_block_kernel,
        out_shape=jax.ShapeDtypeStruct((N, H, W * Cout), x_nhwc.dtype),
        grid_spec=pltpu.PrefetchScalarGridSpec(
            num_scalar_prefetch=0,
            grid=(N,),
            in_specs=[
                pl.BlockSpec((1, H, W * Cin), lambda n: (n, 0, 0)),
                pl.BlockSpec((3, W * Cin, W * Cmid), lambda n: (0, 0, 0)),
                pl.BlockSpec((1, W * Cmid), lambda n: (0, 0)),
                pl.BlockSpec((1, W * Cmid), lambda n: (0, 0)),
                pl.BlockSpec((3, W * Cmid, W * Cout), lambda n: (0, 0, 0)),
                pl.BlockSpec((1, W * Cout), lambda n: (0, 0)),
                pl.BlockSpec((1, W * Cout), lambda n: (0, 0)),
            ],
            out_specs=pl.BlockSpec((1, H, W * Cout), lambda n: (n, 0, 0)),
        ),
        compiler_params=pltpu.CompilerParams(
            dimension_semantics=("parallel",),   # batch across TCs (v7x megacore)
            vmem_limit_bytes=32 * 1024 * 1024,
        ),
    )(x_rows, b1, s1, t1, b2, s2, t2)

    return out_rows.reshape(N, H, W, Cout)


def basic_block_forward(x_nchw, params):
    """PyTorch-layout (NCHW) entry point.  In a ResNet stack keep activations
    NHWC and call basic_block_forward_nhwc directly; these transposes exist only
    for interface parity with the nn.Module."""
    x = jnp.transpose(x_nchw, (0, 2, 3, 1))
    out = basic_block_forward_nhwc(x, params)
    return jnp.transpose(out, (0, 3, 1, 2))


# ----------------------------------------------------------------------------
# Deterministic parameter construction (BN folded to scale/shift, eval mode)
# ----------------------------------------------------------------------------
def make_params(key, inplanes, planes, eps=1e-5):
    keys = jax.random.split(key, 10)
    # PyTorch conv weight layout (Cout, Cin, 3, 3) -> HWIO (3, 3, Cin, Cout)
    w1_oihw = jax.random.normal(keys[0], (planes, inplanes, 3, 3), jnp.float32) * 0.1
    w2_oihw = jax.random.normal(keys[1], (planes, planes, 3, 3), jnp.float32) * 0.1

    def fold_bn(kg, kb, km, kv):
        gamma = jax.random.uniform(kg, (planes,), jnp.float32, 0.5, 1.5)
        beta = jax.random.normal(kb, (planes,), jnp.float32) * 0.1
        mean = jax.random.normal(km, (planes,), jnp.float32) * 0.1
        var = jax.random.uniform(kv, (planes,), jnp.float32, 0.5, 1.5)
        scale = gamma / jnp.sqrt(var + eps)
        shift = beta - mean * scale
        return scale, shift, (gamma, beta, mean, var)

    scale1, shift1, bn1 = fold_bn(keys[2], keys[3], keys[4], keys[5])
    scale2, shift2, bn2 = fold_bn(keys[6], keys[7], keys[8], keys[9])

    params = dict(
        w1=jnp.transpose(w1_oihw, (2, 3, 1, 0)),
        w2=jnp.transpose(w2_oihw, (2, 3, 1, 0)),
        scale1=scale1, shift1=shift1,
        scale2=scale2, shift2=shift2,
    )
    ref = dict(w1_oihw=w1_oihw, w2_oihw=w2_oihw, bn1=bn1, bn2=bn2, eps=eps)
    return params, ref


def reference_forward(x_nchw, ref):
    """Plain-JAX reference (lax.conv) mirroring the PyTorch forward (BN eval)."""
    eps = ref["eps"]

    def conv(x, w):
        return lax.conv_general_dilated(
            x, w, window_strides=(1, 1), padding=((1, 1), (1, 1)),
            dimension_numbers=("NCHW", "OIHW", "NCHW"),
            precision=lax.Precision.HIGHEST)

    def bn(x, p):
        g, b, m, v = p
        rs = (1, -1, 1, 1)
        return (x - m.reshape(rs)) / jnp.sqrt(v.reshape(rs) + eps) * g.reshape(rs) \
            + b.reshape(rs)

    residual = x_nchw
    out = jax.nn.relu(bn(conv(x_nchw, ref["w1_oihw"]), ref["bn1"]))
    out = bn(conv(out, ref["w2_oihw"]), ref["bn2"])
    return jax.nn.relu(out + residual)


# ----------------------------------------------------------------------------
if __name__ == "__main__":
    key = jax.random.PRNGKey(0)
    kx, kp = jax.random.split(key)

    # inplanes == planes == 8, H = W = 16  ->  W*C = 128 (one full lane width).
    N, C, H, W = 2, 8, 16, 16
    x_nchw = jax.random.normal(kx, (N, C, H, W), jnp.float32)
    params, ref = make_params(kp, inplanes=C, planes=C)

    # NCHW -> NHWC once at the model boundary (hoisted out of the block).
    x_nhwc = jnp.transpose(x_nchw, (0, 2, 3, 1))
    fwd = jax.jit(basic_block_forward_nhwc)
    out_nhwc = jax.block_until_ready(fwd(x_nhwc, params))
    out = jnp.transpose(out_nhwc, (0, 3, 1, 2))

    expected = reference_forward(x_nchw, ref)
    np.testing.assert_allclose(np.asarray(out), np.asarray(expected),
                               rtol=1e-4, atol=1e-4)
    print("KERNEL_OK")
</pallas_src>

<mosaic_0001>
module attributes {stable_mosaic.version = 11 : i64} {
  func.func @_basic_block_kernel(%arg0: i32, %arg1: memref<1x16x128xf32, #tpu.memory_space<vmem>>, %arg2: memref<3x128x128xf32, #tpu.memory_space<vmem>>, %arg3: memref<1x128xf32, #tpu.memory_space<vmem>>, %arg4: memref<1x128xf32, #tpu.memory_space<vmem>>, %arg5: memref<3x128x128xf32, #tpu.memory_space<vmem>>, %arg6: memref<1x128xf32, #tpu.memory_space<vmem>>, %arg7: memref<1x128xf32, #tpu.memory_space<vmem>>, %arg8: memref<1x16x128xf32, #tpu.memory_space<vmem>>) attributes {dimension_semantics = [#tpu.dimension_semantics<parallel>], iteration_bounds = array<i64: 2>, scalar_prefetch = 0 : i64, scratch_operands = 0 : i64, tpu.core_type = #tpu.core_type<tc>, window_params = [{transform_indices = @transform_0, window_bounds = array<i64: 1, 16, 128>}, {pipeline_mode = #tpu.pipeline_mode<synchronous>, transform_indices = @transform_1, window_bounds = array<i64: 3, 128, 128>}, {pipeline_mode = #tpu.pipeline_mode<synchronous>, transform_indices = @transform_2, window_bounds = array<i64: 1, 128>}, {pipeline_mode = #tpu.pipeline_mode<synchronous>, transform_indices = @transform_3, window_bounds = array<i64: 1, 128>}, {pipeline_mode = #tpu.pipeline_mode<synchronous>, transform_indices = @transform_4, window_bounds = array<i64: 3, 128, 128>}, {pipeline_mode = #tpu.pipeline_mode<synchronous>, transform_indices = @transform_5, window_bounds = array<i64: 1, 128>}, {pipeline_mode = #tpu.pipeline_mode<synchronous>, transform_indices = @transform_6, window_bounds = array<i64: 1, 128>}, {transform_indices = @transform_7, window_bounds = array<i64: 1, 16, 128>}]} {
    %c0 = arith.constant 0 : index
    %c0_0 = arith.constant 0 : index
    %c0_1 = arith.constant 0 : index
    %0 = vector.load %arg1[%c0, %c0_0, %c0_1] : memref<1x16x128xf32, #tpu.memory_space<vmem>>, vector<1x16x128xf32>
    %1 = vector.shape_cast %0 : vector<1x16x128xf32> to vector<16x128xf32>
    %c0_2 = arith.constant 0 : index
    %c0_3 = arith.constant 0 : index
    %c0_4 = arith.constant 0 : index
    %2 = vector.load %arg2[%c0_2, %c0_3, %c0_4] : memref<3x128x128xf32, #tpu.memory_space<vmem>>, vector<1x128x128xf32>
    %3 = vector.shape_cast %2 : vector<1x128x128xf32> to vector<128x128xf32>
    %cst = arith.constant dense<0.000000e+00> : vector<16x128xf32>
    %4 = tpu.matmul %1, %3, %cst {dimension_numbers = #tpu.dot_dimension_numbers<[1], [0], [0], [1], [0, 0, 1, 1], [], []>} : vector<16x128xf32>, vector<128x128xf32>, vector<16x128xf32> -> vector<16x128xf32>
    %c1 = arith.constant 1 : index
    %c0_5 = arith.constant 0 : index
    %c0_6 = arith.constant 0 : index
    %5 = vector.load %arg2[%c1, %c0_5, %c0_6] : memref<3x128x128xf32, #tpu.memory_space<vmem>>, vector<1x128x128xf32>
    %6 = vector.shape_cast %5 : vector<1x128x128xf32> to vector<128x128xf32>
    %cst_7 = arith.constant dense<0.000000e+00> : vector<16x128xf32>
    %7 = tpu.matmul %1, %6, %cst_7 {dimension_numbers = #tpu.dot_dimension_numbers<[1], [0], [0], [1], [0, 0, 1, 1], [], []>} : vector<16x128xf32>, vector<128x128xf32>, vector<16x128xf32> -> vector<16x128xf32>
    %c2 = arith.constant 2 : index
    %c0_8 = arith.constant 0 : index
    %c0_9 = arith.constant 0 : index
    %8 = vector.load %arg2[%c2, %c0_8, %c0_9] : memref<3x128x128xf32, #tpu.memory_space<vmem>>, vector<1x128x128xf32>
    %9 = vector.shape_cast %8 : vector<1x128x128xf32> to vector<128x128xf32>
    %cst_10 = arith.constant dense<0.000000e+00> : vector<16x128xf32>
    %10 = tpu.matmul %1, %9, %cst_10 {dimension_numbers = #tpu.dot_dimension_numbers<[1], [0], [0], [1], [0, 0, 1, 1], [], []>} : vector<16x128xf32>, vector<128x128xf32>, vector<16x128xf32> -> vector<16x128xf32>
    %cst_11 = arith.constant 0.000000e+00 : f32
    %11 = vector.broadcast %cst_11 : f32 to vector<1x128xf32>
    %12 = vector.extract_strided_slice %4 {offsets = [0, 0], sizes = [15, 128], strides = [1, 1]} : vector<16x128xf32> to vector<15x128xf32>
    %13 = tpu.concatenate %11, %12 in 0 : vector<1x128xf32>, vector<15x128xf32> -> vector<16x128xf32>
    %14 = vector.extract_strided_slice %10 {offsets = [1, 0], sizes = [15, 128], strides = [1, 1]} : vector<16x128xf32> to vector<15x128xf32>
    %15 = tpu.concatenate %14, %11 in 0 : vector<15x128xf32>, vector<1x128xf32> -> vector<16x128xf32>
    %16 = arith.addf %13, %7 : vector<16x128xf32>
    %17 = arith.addf %16, %15 : vector<16x128xf32>
    %c0_12 = arith.constant 0 : index
    %c0_13 = arith.constant 0 : index
    %18 = vector.load %arg3[%c0_12, %c0_13] : memref<1x128xf32, #tpu.memory_space<vmem>>, vector<1x128xf32>
    %19 = vector.broadcast %18 : vector<1x128xf32> to vector<16x128xf32>
    %20 = arith.mulf %17, %19 : vector<16x128xf32>
    %c0_14 = arith.constant 0 : index
    %c0_15 = arith.constant 0 : index
    %21 = vector.load %arg4[%c0_14, %c0_15] : memref<1x128xf32, #tpu.memory_space<vmem>>, vector<1x128xf32>
    %22 = vector.broadcast %21 : vector<1x128xf32> to vector<16x128xf32>
    %23 = arith.addf %20, %22 : vector<16x128xf32>
    %cst_16 = arith.constant 0.000000e+00 : f32
    %24 = vector.broadcast %cst_16 : f32 to vector<16x128xf32>
    %25 = arith.maximumf %23, %24 : vector<16x128xf32>
    %c0_17 = arith.constant 0 : index
    %c0_18 = arith.constant 0 : index
    %c0_19 = arith.constant 0 : index
    %26 = vector.load %arg5[%c0_17, %c0_18, %c0_19] : memref<3x128x128xf32, #tpu.memory_space<vmem>>, vector<1x128x128xf32>
    %27 = vector.shape_cast %26 : vector<1x128x128xf32> to vector<128x128xf32>
    %cst_20 = arith.constant dense<0.000000e+00> : vector<16x128xf32>
    %28 = tpu.matmul %25, %27, %cst_20 {dimension_numbers = #tpu.dot_dimension_numbers<[1], [0], [0], [1], [0, 0, 1, 1], [], []>} : vector<16x128xf32>, vector<128x128xf32>, vector<16x128xf32> -> vector<16x128xf32>
    %c1_21 = arith.constant 1 : index
    %c0_22 = arith.constant 0 : index
    %c0_23 = arith.constant 0 : index
    %29 = vector.load %arg5[%c1_21, %c0_22, %c0_23] : memref<3x128x128xf32, #tpu.memory_space<vmem>>, vector<1x128x128xf32>
    %30 = vector.shape_cast %29 : vector<1x128x128xf32> to vector<128x128xf32>
    %cst_24 = arith.constant dense<0.000000e+00> : vector<16x128xf32>
    %31 = tpu.matmul %25, %30, %cst_24 {dimension_numbers = #tpu.dot_dimension_numbers<[1], [0], [0], [1], [0, 0, 1, 1], [], []>} : vector<16x128xf32>, vector<128x128xf32>, vector<16x128xf32> -> vector<16x128xf32>
    %c2_25 = arith.constant 2 : index
    %c0_26 = arith.constant 0 : index
    %c0_27 = arith.constant 0 : index
    %32 = vector.load %arg5[%c2_25, %c0_26, %c0_27] : memref<3x128x128xf32, #tpu.memory_space<vmem>>, vector<1x128x128xf32>
    %33 = vector.shape_cast %32 : vector<1x128x128xf32> to vector<128x128xf32>
    %cst_28 = arith.constant dense<0.000000e+00> : vector<16x128xf32>
    %34 = tpu.matmul %25, %33, %cst_28 {dimension_numbers = #tpu.dot_dimension_numbers<[1], [0], [0], [1], [0, 0, 1, 1], [], []>} : vector<16x128xf32>, vector<128x128xf32>, vector<16x128xf32> -> vector<16x128xf32>
    %cst_29 = arith.constant 0.000000e+00 : f32
    %35 = vector.broadcast %cst_29 : f32 to vector<1x128xf32>
    %36 = vector.extract_strided_slice %28 {offsets = [0, 0], sizes = [15, 128], strides = [1, 1]} : vector<16x128xf32> to vector<15x128xf32>
    %37 = tpu.concatenate %35, %36 in 0 : vector<1x128xf32>, vector<15x128xf32> -> vector<16x128xf32>
    %38 = vector.extract_strided_slice %34 {offsets = [1, 0], sizes = [15, 128], strides = [1, 1]} : vector<16x128xf32> to vector<15x128xf32>
    %39 = tpu.concatenate %38, %35 in 0 : vector<15x128xf32>, vector<1x128xf32> -> vector<16x128xf32>
    %40 = arith.addf %37, %31 : vector<16x128xf32>
    %41 = arith.addf %40, %39 : vector<16x128xf32>
    %c0_30 = arith.constant 0 : index
    %c0_31 = arith.constant 0 : index
    %42 = vector.load %arg6[%c0_30, %c0_31] : memref<1x128xf32, #tpu.memory_space<vmem>>, vector<1x128xf32>
    %43 = vector.broadcast %42 : vector<1x128xf32> to vector<16x128xf32>
    %44 = arith.mulf %41, %43 : vector<16x128xf32>
    %c0_32 = arith.constant 0 : index
    %c0_33 = arith.constant 0 : index
    %45 = vector.load %arg7[%c0_32, %c0_33] : memref<1x128xf32, #tpu.memory_space<vmem>>, vector<1x128xf32>
    %46 = vector.broadcast %45 : vector<1x128xf32> to vector<16x128xf32>
    %47 = arith.addf %44, %46 : vector<16x128xf32>
    %48 = arith.addf %47, %1 : vector<16x128xf32>
    %cst_34 = arith.constant 0.000000e+00 : f32
    %49 = vector.broadcast %cst_34 : f32 to vector<16x128xf32>
    %50 = arith.maximumf %48, %49 : vector<16x128xf32>
    %c0_35 = arith.constant 0 : index
    %c0_36 = arith.constant 0 : index
    %c0_37 = arith.constant 0 : index
    %51 = vector.load %arg8[%c0_35, %c0_36, %c0_37] : memref<1x16x128xf32, #tpu.memory_space<vmem>>, vector<1x16x128xf32>
    %52 = vector.shape_cast %51 : vector<1x16x128xf32> to vector<16x128xf32>
    %53 = vector.shape_cast %50 : vector<16x128xf32> to vector<1x16x128xf32>
    tpu.vector_store %arg8[%c0_35, %c0_36, %c0_37], %53 {strides = array<i32>} : memref<1x16x128xf32, #tpu.memory_space<vmem>>, vector<1x16x128xf32>,
    return
  }
  func.func @transform_0(%arg0: i32) -> (i32, i32, i32) {
    %c0_i32 = arith.constant 0 : i32
    %c0_i32_0 = arith.constant 0 : i32
    %c0_i32_1 = arith.constant 0 : i32
    return %arg0, %c0_i32, %c0_i32_0 : i32, i32, i32
  }
  func.func @transform_1(%arg0: i32) -> (i32, i32, i32) {
    %c0_i32 = arith.constant 0 : i32
    %c0_i32_0 = arith.constant 0 : i32
    %c0_i32_1 = arith.constant 0 : i32
    %c0_i32_2 = arith.constant 0 : i32
    return %c0_i32, %c0_i32_0, %c0_i32_1 : i32, i32, i32
  }
  func.func @transform_2(%arg0: i32) -> (i32, i32) {
    %c0_i32 = arith.constant 0 : i32
    %c0_i32_0 = arith.constant 0 : i32
    %c0_i32_1 = arith.constant 0 : i32
    return %c0_i32, %c0_i32_0 : i32, i32
  }
  func.func @transform_3(%arg0: i32) -> (i32, i32) {
    %c0_i32 = arith.constant 0 : i32
    %c0_i32_0 = arith.constant 0 : i32
    %c0_i32_1 = arith.constant 0 : i32
    return %c0_i32, %c0_i32_0 : i32, i32
  }
  func.func @transform_4(%arg0: i32) -> (i32, i32, i32) {
    %c0_i32 = arith.constant 0 : i32
    %c0_i32_0 = arith.constant 0 : i32
    %c0_i32_1 = arith.constant 0 : i32
    %c0_i32_2 = arith.constant 0 : i32
    return %c0_i32, %c0_i32_0, %c0_i32_1 : i32, i32, i32
  }
  func.func @transform_5(%arg0: i32) -> (i32, i32) {
    %c0_i32 = arith.constant 0 : i32
    %c0_i32_0 = arith.constant 0 : i32
    %c0_i32_1 = arith.constant 0 : i32
    return %c0_i32, %c0_i32_0 : i32, i32
  }
  func.func @transform_6(%arg0: i32) -> (i32, i32) {
    %c0_i32 = arith.constant 0 : i32
    %c0_i32_0 = arith.constant 0 : i32
    %c0_i32_1 = arith.constant 0 : i32
    return %c0_i32, %c0_i32_0 : i32, i32
  }
  func.func @transform_7(%arg0: i32) -> (i32, i32, i32) {
    %c0_i32 = arith.constant 0 : i32
    %c0_i32_0 = arith.constant 0 : i32
    %c0_i32_1 = arith.constant 0 : i32
    return %arg0, %c0_i32, %c0_i32_0 : i32, i32, i32
  }
}

</mosaic_0001>

<bundles_post_ra>
// kernel: tile.23
= control target key start
LH: loop header
LB: loop body
LE: loop exit
PB: predicated region body
PF: predicated region fallthrough
CT: control target
= control target key end

     0   :  { %s28_s0 = inlined_call_operand.vmem [shape: f32[8], index: 0, kind: input, shape index: {}]   ;;  %s29_s1 = inlined_call_operand.vmem [shape: f32[16,8], index: 1, kind: output, shape index: {}]  }
   0x1   :  { %v4_v0 = vld [vmem:[%s28_s0] ss:$0 sm:$0xff] }
   0x2   :  { %5 = vst [vmem:[%s29_s1] sm:$0xff] %v4_v0  ;;  %8 = vst [vmem:[%s29_s1 + $0x8] sm:$0xff] %v4_v0 }

// kernel: tile.24
= control target key start
LH: loop header
LB: loop body
LE: loop exit
PB: predicated region body
PF: predicated region fallthrough
CT: control target
= control target key end

     0   :  { %s133_s10 = smov 120   ;;  %s134_s11 = smov 104   ;;  %vm3_vm0 = vcmask 64512   ;;  %vm9_vm1 = vcmask 1048512   ;;  %vm15_vm2 = vcmask 982912   ;;  %vm21_vm3 = vcmask 917312   ;;  %s209_s0 = inlined_call_operand.vmem [shape: f32[16,8], index: 0, kind: input, shape index: {}]   ;;  %s210_s1 = inlined_call_operand.vmem [shape: f32[1,128], index: 1, kind: output, shape index: {}]  }
   0x1   :  { %v103_v0 = vld [vmem:[%s209_s0 + $0xf] sm:$0x1]   ;;  %v105_v1 = vld [vmem:[%s209_s0 + $0xd] sm:$0x1]   ;;  %v104_v2 = vld [vmem:[%s209_s0 + $0xe] sm:$0x1]  }
   0x2   :  { %7 = vrot.lane.b32.xlu0 %v103_v0, %s133_s10  ;;  %19 = vrot.lane.b32.xlu1 %v105_v1, %s134_s11  ;;  %v106_v3 = vld [vmem:[%s209_s0 + $0xc] sm:$0x1]   ;;  %s135_s16 = smov 112   ;;  %s136_s17 = smov 96   ;;  %v107_v4 = vld [vmem:[%s209_s0 + $0xb] sm:$0x1]  }
   0x3   :  { %v108_v5 = vld [vmem:[%s209_s0 + $0xa] sm:$0x1]   ;;  %v2_v6 = vld [vmem:[%s209_s0] sm:$0x1]   ;;  %s137_s24 = smov 88   ;;  %s138_s25 = smov 80  }
   0x4   :  { %4 = vst.msk [vmem:[#allocation0] sm:$0x1] %vm3_vm0, %v2_v6   ;;  %v109_v7 = vld [vmem:[%s209_s0 + $0x9] sm:$0x1]   ;;  %v110_v8 = vld [vmem:[%s209_s0 + $0x8] sm:$0x1]  }
   0x5   :  { %s139_s30 = smov 72   ;;  %s140_s2 = smov 64   ;;  %v111_v9 = vld [vmem:[%s209_s0 + $0x7] sm:$0x1]   ;;  %v112_v10 = vld [vmem:[%s209_s0 + $0x6] sm:$0x1]  }
   0x6   :  { %13 = vrot.lane.b32.xlu0 %v104_v2, %s135_s16  ;;  %25 = vrot.lane.b32.xlu1 %v106_v3, %s136_s17  ;;  %s141_s7 = smov 56   ;;  %s142_s8 = smov 48   ;;  %v113_v11 = vld [vmem:[%s209_s0 + $0x5] sm:$0x1]   ;;  %v114_v12 = vld [vmem:[%s209_s0 + $0x4] sm:$0x1]  }
   0x7   :  { %s143_s13 = smov 40   ;;  %s144_s14 = smov 32   ;;  %v115_v13 = vld [vmem:[%s209_s0 + $0x3] sm:$0x1]   ;;  %v116_v14 = vld [vmem:[%s209_s0 + $0x2] sm:$0x1]  }
   0x8   :  { %s145_s19 = smov 24   ;;  %s146_s20 = smov 16   ;;  %v117_v15 = vld [vmem:[%s209_s0 + $0x1] sm:$0x1]   ;;  %vm27_vm4 = vcmask 851712   ;;  %vm33_vm5 = vcmask 786112  }
   0x9   :  { %s147_s0 = smov 8   ;;  %vm39_vm6 = vcmask 720512   ;;  %vm45_vm7 = vcmask 654912   ;;  %vm51_vm8 = vcmask 589312   ;;  %vm57_vm9 = vcmask 523712  }
   0xa   :  { %31 = vrot.lane.b32.xlu0 %v107_v4, %s137_s24  ;;  %37 = vrot.lane.b32.xlu1 %v108_v5, %s138_s25  ;;  %vm63_vm10 = vcmask 458112   ;;  %vm69_vm11 = vcmask 392512   ;;  %vm75_vm12 = vcmask 326912   ;;  %vm81_vm13 = vcmask 261312  }
   0xb   :  { %vm87_vm14 = vcmask 195712   ;;  %vm93_vm15 = vcmask 130112  }
   0xe   :  { %43 = vrot.lane.b32.xlu0 %v109_v7, %s139_s30  ;;  %49 = vrot.lane.b32.xlu1 %v110_v8, %s140_s2 }
  0x12   :  { %55 = vrot.lane.b32.xlu0 %v111_v9, %s141_s7  ;;  %61 = vrot.lane.b32.xlu1 %v112_v10, %s142_s8 }
  0x16   :  { %67 = vrot.lane.b32.xlu0 %v113_v11, %s143_s13  ;;  %73 = vrot.lane.b32.xlu1 %v114_v12, %s144_s14 }
  0x1a   :  { %79 = vrot.lane.b32.xlu0 %v115_v13, %s145_s19  ;;  %85 = vrot.lane.b32.xlu1 %v116_v14, %s146_s20 }
  0x1e   :  { %91 = vrot.lane.b32.xlu0 %v117_v15, %s147_s0 }
  0x74   :  { %v8_v16 = vpop.permute.xlu0 %7   ;;  %v20_v17 = vpop.permute.xlu1 %19  }
  0x75   :  { %10 = vst.msk [vmem:[#allocation0] sm:$0x1] %vm9_vm1, %v8_v16  }
  0x78   :  { %v14_v18 = vpop.permute.xlu0 %13   ;;  %v26_v19 = vpop.permute.xlu1 %25  }
  0x79   :  { %16 = vst.msk [vmem:[#allocation0] sm:$0x1] %vm15_vm2, %v14_v18  }
  0x7a   :  { %22 = vst.msk [vmem:[#allocation0] sm:$0x1] %vm21_vm3, %v20_v17  }
  0x7b   :  { %28 = vst.msk [vmem:[#allocation0] sm:$0x1] %vm27_vm4, %v26_v19  }
  0x7c   :  { %v32_v20 = vpop.permute.xlu0 %31   ;;  %v38_v21 = vpop.permute.xlu1 %37  }
  0x7d   :  { %34 = vst.msk [vmem:[#allocation0] sm:$0x1] %vm33_vm5, %v32_v20  }
  0x7e   :  { %40 = vst.msk [vmem:[#allocation0] sm:$0x1] %vm39_vm6, %v38_v21  }
  0x80   :  { %v44_v22 = vpop.permute.xlu0 %43   ;;  %v50_v23 = vpop.permute.xlu1 %49  }
  0x81   :  { %46 = vst.msk [vmem:[#allocation0] sm:$0x1] %vm45_vm7, %v44_v22  }
  0x82   :  { %52 = vst.msk [vmem:[#allocation0] sm:$0x1] %vm51_vm8, %v50_v23  }
  0x84   :  { %v56_v24 = vpop.permute.xlu0 %55   ;;  %v62_v25 = vpop.permute.xlu1 %61  }
  0x85   :  { %58 = vst.msk [vmem:[#allocation0] sm:$0x1] %vm57_vm9, %v56_v24  }
  0x86   :  { %64 = vst.msk [vmem:[#allocation0] sm:$0x1] %vm63_vm10, %v62_v25  }
  0x88   :  { %v68_v26 = vpop.permute.xlu0 %67   ;;  %v74_v27 = vpop.permute.xlu1 %73  }
  0x89   :  { %70 = vst.msk [vmem:[#allocation0] sm:$0x1] %vm69_vm11, %v68_v26  }
  0x8a   :  { %76 = vst.msk [vmem:[#allocation0] sm:$0x1] %vm75_vm12, %v74_v27  }
  0x8c   :  { %v80_v28 = vpop.permute.xlu0 %79   ;;  %v86_v29 = vpop.permute.xlu1 %85  }
  0x8d   :  { %82 = vst.msk [vmem:[#allocation0] sm:$0x1] %vm81_vm13, %v80_v28  }
  0x8e   :  { %88 = vst.msk [vmem:[#allocation0] sm:$0x1] %vm87_vm14, %v86_v29  }
  0x90   :  { %v92_v30 = vpop.permute.xlu0 %91  }
  0x91   :  { %94 = vst.msk [vmem:[#allocation0] sm:$0x1] %vm93_vm15, %v92_v30  }
  0x98   :  { %v99_v31 = vld [vmem:[#allocation0] sm:$0x1] }
  0x99   :  { %102 = vst [vmem:[%s210_s1] sm:$0x1] %v99_v31 }

// kernel: basic_block_forward_nhwc.1
= control target key start
LH: loop header
LB: loop body
LE: loop exit
PB: predicated region body
PF: predicated region fallthrough
CT: control target
= control target key end

     0   :  { %s1427_s24 = smov 0   ;;  %s1775_s0 = inlined_call_operand.vmem [shape: f32[2,16,128], index: 0, kind: input, shape index: {}]   ;;  %s1776_s1 = inlined_call_operand.vmem [shape: f32[3,128,128], index: 1, kind: input, shape index: {}]   ;;  %s1777_s2 = inlined_call_operand.vmem [shape: f32[1,128], index: 2, kind: input, shape index: {}]   ;;  %s1778_s3 = inlined_call_operand.vmem [shape: f32[1,128], index: 3, kind: input, shape index: {}]   ;;  %s1779_s4 = inlined_call_operand.vmem [shape: f32[3,128,128], index: 4, kind: input, shape index: {}]   ;;  %s1780_s5 = inlined_call_operand.vmem [shape: f32[1,128], index: 5, kind: input, shape index: {}]   ;;  %s1781_s6 = inlined_call_operand.vmem [shape: f32[1,128], index: 6, kind: input, shape index: {}]   ;;  %s1782_s7 = inlined_call_operand.vmem [shape: f32[2,16,128], index: 7, kind: output, shape index: {}]  }
   0x1 LB: > { %s972_s25 = sadd.s32 4294967295, %s1385_s24   ;;  %p976_p0 = scmp.ge.s32.totalorder %s1385_s24, 1  ;;  %s1385_s24 = sphi %s1427_s24, %s17_s24  }
   0x2   : > { %p237_p1 = scmp.lt.s32.totalorder %s1385_s24, 3 }
   0x4   : > { %p238_p2 = pnand %p976_p0, %p237_p1 }
   0x5   : > { %p269_p3 = scmp.lt.s32.totalorder (!%p238_p2), %s972_s25, 1 }
   0x6   : > { %241 = sbr.rel (%p238_p2) target bundleno = 525 (0x20d), region = 48 }
   0xb   : > { %v296_v0 = vld [vmem:[%s1776_s1 + $0x78] sm:$0xff]  ;;  %v295_v1 = vld [vmem:[%s1776_s1 + $0x70] sm:$0xff]  ;;  %v294_v4 = vld [vmem:[%s1776_s1 + $0x68] sm:$0xff]  ;;  %s1784_s25 = smov (!%p269_p3, %s972_s25), 1  ;;  %vm558_vm0 = vcmask 1040384   ;;  %vm567_vm1 = vcmask 1046528  }
   0xc   : > { %v996_v2 = vld [vmem:[%s1776_s1 + $0xf8] sm:$0xff]  ;;  %1161 = vmatprep.subr.mxu0 %v296_v0  ;;  %v995_v3 = vld [vmem:[%s1776_s1 + $0xf0] sm:$0xff]  ;;  %v994_v5 = vld [vmem:[%s1776_s1 + $0xe8] sm:$0xff]  ;;  %s1051_s9 = sshll.u32 %s1784_s25, 4 }
   0xd   : > { %1196 = vmatprep.subr.mxu1 %v996_v2  ;;  %1162 = vmatpush3.msra.mxu0 %v296_v0  ;;  %v293_v6 = vld [vmem:[%s1776_s1 + $0x60] sm:$0xff]  ;;  %v292_v8 = vld [vmem:[%s1776_s1 + $0x58] sm:$0xff]  ;;  %v291_v10 = vld [vmem:[%s1776_s1 + $0x50] sm:$0xff]  ;;  %s273_s16 = scalar_lea.vmem %s1775_s0, %s1051_s9  ;;  %s278_s29 = scalar_lea.vmem %s1782_s7, %s1051_s9 }
   0xe   : > { %1197 = vmatpush3.msra.mxu1 %v996_v2  ;;  %1163 = vmatprep.subr.mxu0 %v295_v1  ;;  %v993_v7 = vld [vmem:[%s1776_s1 + $0xe0] sm:$0xff]  ;;  %v992_v9 = vld [vmem:[%s1776_s1 + $0xd8] sm:$0xff]  ;;  %v991_v11 = vld [vmem:[%s1776_s1 + $0xd0] sm:$0xff] }
   0xf   : > { %1198 = vmatprep.subr.mxu1 %v995_v3  ;;  %1164 = vmatpush3.msra.mxu0 %v295_v1  ;;  %v290_v12 = vld [vmem:[%s1776_s1 + $0x48] sm:$0xff]  ;;  %v289_v14 = vld [vmem:[%s1776_s1 + $0x40] sm:$0xff]  ;;  %v288_v16 = vld [vmem:[%s1776_s1 + $0x38] sm:$0xff] }
  0x10   : > { %1199 = vmatpush3.msra.mxu1 %v995_v3  ;;  %1165 = vmatprep.subr.mxu0 %v294_v4  ;;  %v990_v13 = vld [vmem:[%s1776_s1 + $0xc8] sm:$0xff]  ;;  %v989_v15 = vld [vmem:[%s1776_s1 + $0xc0] sm:$0xff]  ;;  %v988_v17 = vld [vmem:[%s1776_s1 + $0xb8] sm:$0xff] }
  0x11   : > { %1200 = vmatprep.subr.mxu1 %v994_v5  ;;  %1166 = vmatpush3.msra.mxu0 %v294_v4  ;;  %v287_v18 = vld [vmem:[%s1776_s1 + $0x30] sm:$0xff]  ;;  %v286_v20 = vld [vmem:[%s1776_s1 + $0x28] sm:$0xff]  ;;  %v285_v22 = vld [vmem:[%s1776_s1 + $0x20] sm:$0xff] }
  0x12   : > { %1201 = vmatpush3.msra.mxu1 %v994_v5  ;;  %1167 = vmatprep.subr.mxu0 %v293_v6  ;;  %v987_v19 = vld [vmem:[%s1776_s1 + $0xb0] sm:$0xff]  ;;  %v986_v21 = vld [vmem:[%s1776_s1 + $0xa8] sm:$0xff]  ;;  %v985_v23 = vld [vmem:[%s1776_s1 + $0xa0] sm:$0xff] }
  0x13   : > { %1202 = vmatprep.subr.mxu1 %v993_v7  ;;  %1168 = vmatpush3.msra.mxu0 %v293_v6  ;;  %v284_v24 = vld [vmem:[%s1776_s1 + $0x18] sm:$0xff]  ;;  %v283_v26 = vld [vmem:[%s1776_s1 + $0x10] sm:$0xff]  ;;  %v282_v28 = vld [vmem:[%s1776_s1 + $0x8] sm:$0xff] }
  0x14   : > { %1203 = vmatpush3.msra.mxu1 %v993_v7  ;;  %1169 = vmatprep.subr.mxu0 %v292_v8  ;;  %v984_v25 = vld [vmem:[%s1776_s1 + $0x98] sm:$0xff]  ;;  %v983_v27 = vld [vmem:[%s1776_s1 + $0x90] sm:$0xff]  ;;  %v1534_v29 = vld [vmem:[%s273_s16] sm:$0xff] }
  0x15   : > { %1204 = vmatprep.subr.mxu1 %v992_v9  ;;  %1170 = vmatpush3.msra.mxu0 %v292_v8  ;;  %v982_v30 = vld [vmem:[%s1776_s1 + $0x88] sm:$0xff]  ;;  %v281_v31 = vld [vmem:[%s1776_s1] sm:$0xff]  ;;  %v1012_v34 = vld [vmem:[%s1776_s1 + $0x178] sm:$0xff] }
  0x16   : > { %1205 = vmatpush3.msra.mxu1 %v992_v9  ;;  %1171 = vmatprep.subr.mxu0 %v291_v10  ;;  %v981_v32 = vld [vmem:[%s1776_s1 + $0x80] sm:$0xff]  ;;  %v1546_v33 = vld [vmem:[%s273_s16 + $0x8] sm:$0xff]  ;;  %v1011_v35 = vld [vmem:[%s1776_s1 + $0x170] sm:$0xff] }
  0x17   : > { %1206 = vmatprep.subr.mxu1 %v991_v11  ;;  %1172 = vmatpush3.msra.mxu0 %v291_v10  ;;  %v1010_v36 = vld [vmem:[%s1776_s1 + $0x168] sm:$0xff]  ;;  %v1009_v37 = vld [vmem:[%s1776_s1 + $0x160] sm:$0xff]  ;;  %v1008_v38 = vld [vmem:[%s1776_s1 + $0x158] sm:$0xff] }
  0x18   : > { %1207 = vmatpush3.msra.mxu1 %v991_v11  ;;  %1173 = vmatprep.subr.mxu0 %v290_v12  ;;  %v1007_v39 = vld [vmem:[%s1776_s1 + $0x150] sm:$0xff]  ;;  %v1006_v40 = vld [vmem:[%s1776_s1 + $0x148] sm:$0xff]  ;;  %v1005_v41 = vld [vmem:[%s1776_s1 + $0x140] sm:$0xff] }
  0x19   : > { %1208 = vmatprep.subr.mxu1 %v990_v13  ;;  %1174 = vmatpush3.msra.mxu0 %v290_v12  ;;  %v1004_v42 = vld [vmem:[%s1776_s1 + $0x138] sm:$0xff]  ;;  %v1003_v43 = vld [vmem:[%s1776_s1 + $0x130] sm:$0xff]  ;;  %v1002_v44 = vld [vmem:[%s1776_s1 + $0x128] sm:$0xff] }
  0x1a   : > { %1209 = vmatpush3.msra.mxu1 %v990_v13  ;;  %1175 = vmatprep.subr.mxu0 %v289_v14  ;;  %v1001_v45 = vld [vmem:[%s1776_s1 + $0x120] sm:$0xff]  ;;  %v1000_v46 = vld [vmem:[%s1776_s1 + $0x118] sm:$0xff]  ;;  %v999_v47 = vld [vmem:[%s1776_s1 + $0x110] sm:$0xff] }
  0x1b   : > { %1210 = vmatprep.subr.mxu1 %v989_v15  ;;  %1176 = vmatpush3.msra.mxu0 %v289_v14  ;;  %v998_v48 = vld [vmem:[%s1776_s1 + $0x108] sm:$0xff]  ;;  %v997_v49 = vld [vmem:[%s1776_s1 + $0x100] sm:$0xff]  ;;  %v613_v50 = vld [vmem:[%s1779_s4 + $0x78] sm:$0xff] }
  0x1c   : > { %1211 = vmatpush3.msra.mxu1 %v989_v15  ;;  %1177 = vmatprep.subr.mxu0 %v288_v16  ;;  %v1030_v51 = vld [vmem:[%s1779_s4 + $0xf8] sm:$0xff]  ;;  %v612_v52 = vld [vmem:[%s1779_s4 + $0x70] sm:$0xff]  ;;  %v611_v54 = vld [vmem:[%s1779_s4 + $0x68] sm:$0xff] }
  0x1d   : > { %1212 = vmatprep.subr.mxu1 %v988_v17  ;;  %1178 = vmatpush3.msra.mxu0 %v288_v16  ;;  %v1029_v53 = vld [vmem:[%s1779_s4 + $0xf0] sm:$0xff]  ;;  %v1028_v55 = vld [vmem:[%s1779_s4 + $0xe8] sm:$0xff]  ;;  %v610_v56 = vld [vmem:[%s1779_s4 + $0x60] sm:$0xff] }
  0x1e   : > { %1213 = vmatpush3.msra.mxu1 %v988_v17  ;;  %1179 = vmatprep.subr.mxu0 %v287_v18  ;;  %v1027_v57 = vld [vmem:[%s1779_s4 + $0xe0] sm:$0xff]  ;;  %v609_v58 = vld [vmem:[%s1779_s4 + $0x58] sm:$0xff]  ;;  %v608_v60 = vld [vmem:[%s1779_s4 + $0x50] sm:$0xff] }
  0x1f   : > { %1214 = vmatprep.subr.mxu1 %v987_v19  ;;  %1180 = vmatpush3.msra.mxu0 %v287_v18  ;;  %v1026_v59 = vld [vmem:[%s1779_s4 + $0xd8] sm:$0xff]  ;;  %v1025_v61 = vld [vmem:[%s1779_s4 + $0xd0] sm:$0xff]  ;;  %v607_v62 = vld [vmem:[%s1779_s4 + $0x48] sm:$0xff] }
  0x20   : > { %1215 = vmatpush3.msra.mxu1 %v987_v19  ;;  %1181 = vmatprep.subr.mxu0 %v286_v20  ;;  %v1024_v63 = vld [vmem:[%s1779_s4 + $0xc8] sm:$0xff]  ;;  %v606_v0 = vld [vmem:[%s1779_s4 + $0x40] sm:$0xff]  ;;  %v605_v2 = vld [vmem:[%s1779_s4 + $0x38] sm:$0xff] }
  0x21   : > { %1216 = vmatprep.subr.mxu1 %v986_v21  ;;  %1182 = vmatpush3.msra.mxu0 %v286_v20  ;;  %v1023_v1 = vld [vmem:[%s1779_s4 + $0xc0] sm:$0xff]  ;;  %v1022_v3 = vld [vmem:[%s1779_s4 + $0xb8] sm:$0xff]  ;;  %v604_v4 = vld [vmem:[%s1779_s4 + $0x30] sm:$0xff] }
  0x22   : > { %1217 = vmatpush3.msra.mxu1 %v986_v21  ;;  %1183 = vmatprep.subr.mxu0 %v285_v22  ;;  %v1021_v5 = vld [vmem:[%s1779_s4 + $0xb0] sm:$0xff]  ;;  %v603_v6 = vld [vmem:[%s1779_s4 + $0x28] sm:$0xff]  ;;  %v602_v8 = vld [vmem:[%s1779_s4 + $0x20] sm:$0xff] }
  0x23   : > { %1218 = vmatprep.subr.mxu1 %v985_v23  ;;  %1184 = vmatpush3.msra.mxu0 %v285_v22  ;;  %v1020_v7 = vld [vmem:[%s1779_s4 + $0xa8] sm:$0xff]  ;;  %v1019_v9 = vld [vmem:[%s1779_s4 + $0xa0] sm:$0xff]  ;;  %v601_v10 = vld [vmem:[%s1779_s4 + $0x18] sm:$0xff] }
  0x24   : > { %1219 = vmatpush3.msra.mxu1 %v985_v23  ;;  %1185 = vmatprep.subr.mxu0 %v284_v24  ;;  %v1018_v11 = vld [vmem:[%s1779_s4 + $0x98] sm:$0xff]  ;;  %v600_v12 = vld [vmem:[%s1779_s4 + $0x10] sm:$0xff]  ;;  %v599_v14 = vld [vmem:[%s1779_s4 + $0x8] sm:$0xff] }
  0x25   : > { %1220 = vmatprep.subr.mxu1 %v984_v25  ;;  %1186 = vmatpush3.msra.mxu0 %v284_v24  ;;  %v1017_v13 = vld [vmem:[%s1779_s4 + $0x90] sm:$0xff]  ;;  %v1016_v15 = vld [vmem:[%s1779_s4 + $0x88] sm:$0xff]  ;;  %v598_v16 = vld [vmem:[%s1779_s4] sm:$0xff] }
  0x26   : > { %1221 = vmatpush3.msra.mxu1 %v984_v25  ;;  %1187 = vmatprep.subr.mxu0 %v283_v26  ;;  %v1015_v17 = vld [vmem:[%s1779_s4 + $0x80] sm:$0xff]  ;;  %v1046_v18 = vld [vmem:[%s1779_s4 + $0x178] sm:$0xff] }
  0x27   : > { %1222 = vmatprep.subr.mxu1 %v983_v27  ;;  %1188 = vmatpush3.msra.mxu0 %v283_v26 }
  0x28   : > { %1223 = vmatpush3.msra.mxu1 %v983_v27  ;;  %1189 = vmatprep.subr.mxu0 %v282_v28 }
  0x29   : > { %1193 = vmatprep.mubr.f32.mxu0 %v1534_v29  ;;  %1190 = vmatpush3.msra.mxu0 %v282_v28 }
  0x2a   : > { %1224 = vmatprep.subr.mxu1 %v982_v30  ;;  %1191 = vmatprep.subr.mxu0 %v281_v31 }
  0x2b   : > { %1225 = vmatpush3.msra.mxu1 %v982_v30  ;;  %1192 = vmatpush3.msra.mxu0 %v281_v31 }
  0x2c   : > { %1226 = vmatprep.subr.mxu1 %v981_v32  ;;  %1194 = vmatmul.mubr.f32.vlgmr.msra.gmra.mxu0 %v1546_v33 }
  0x2d   : > { %1231 = vmatprep.subr.mxu0 %v1012_v34  ;;  %1227 = vmatpush3.msra.mxu1 %v981_v32 }
  0x2e   : > { %1232 = vmatpush3.msra.mxu0 %v1012_v34  ;;  %1228 = vmatprep.mubr.f32.mxu1 %v1534_v29  ;;  %v1013_v34 = vld [vmem:[%s1777_s2] ss:$0 sm:$0xff] }
  0x2f   : > { %1233 = vmatprep.subr.mxu0 %v1011_v35  ;;  %1229 = vmatmul.mubr.f32.vlgmr.msra.gmra.mxu1 %v1546_v33 }
  0x30   : > { %1234 = vmatpush3.msra.mxu0 %v1011_v35  ;;  %1263 = vmatprep.mubr.f32.mxu0 %v1534_v29 }
  0x31   : > { %1235 = vmatprep.subr.mxu0 %v1010_v36  ;;  %1266 = vmatprep.subr.mxu1 %v613_v50 }
  0x32   : > { %1236 = vmatpush3.msra.mxu0 %v1010_v36  ;;  %1267 = vmatpush3.msra.mxu1 %v613_v50  ;;  %v1042_v50 = vld [vmem:[%s1779_s4 + $0x158] sm:$0xff] }
  0x33   : > { %1237 = vmatprep.subr.mxu0 %v1009_v37  ;;  %1268 = vmatprep.subr.mxu1 %v612_v52 }
  0x34   : > { %1238 = vmatpush3.msra.mxu0 %v1009_v37  ;;  %1269 = vmatpush3.msra.mxu1 %v612_v52  ;;  %v1040_v52 = vld [vmem:[%s1779_s4 + $0x148] sm:$0xff] }
  0x35   : > { %1239 = vmatprep.subr.mxu0 %v1008_v38  ;;  %1270 = vmatprep.subr.mxu1 %v611_v54 }
  0x36   : > { %1240 = vmatpush3.msra.mxu0 %v1008_v38  ;;  %1271 = vmatpush3.msra.mxu1 %v611_v54  ;;  %v1038_v54 = vld [vmem:[%s1779_s4 + $0x138] sm:$0xff] }
  0x37   : > { %1241 = vmatprep.subr.mxu0 %v1007_v39  ;;  %1272 = vmatprep.subr.mxu1 %v610_v56 }
  0x38   : > { %1242 = vmatpush3.msra.mxu0 %v1007_v39  ;;  %1273 = vmatpush3.msra.mxu1 %v610_v56  ;;  %v1036_v56 = vld [vmem:[%s1779_s4 + $0x128] sm:$0xff] }
  0x39   : > { %1243 = vmatprep.subr.mxu0 %v1006_v40  ;;  %1274 = vmatprep.subr.mxu1 %v609_v58 }
  0x3a   : > { %1244 = vmatpush3.msra.mxu0 %v1006_v40  ;;  %1275 = vmatpush3.msra.mxu1 %v609_v58  ;;  %v1034_v58 = vld [vmem:[%s1779_s4 + $0x118] sm:$0xff] }
  0x3b   : > { %1245 = vmatprep.subr.mxu0 %v1005_v41  ;;  %1276 = vmatprep.subr.mxu1 %v608_v60 }
  0x3c   : > { %1246 = vmatpush3.msra.mxu0 %v1005_v41  ;;  %1277 = vmatpush3.msra.mxu1 %v608_v60  ;;  %v1014_v41 = vld [vmem:[%s1778_s3] ss:$0 sm:$0xff]  ;;  %v1032_v60 = vld [vmem:[%s1779_s4 + $0x108] sm:$0xff] }
  0x3d   : > { %1247 = vmatprep.subr.mxu0 %v1004_v42  ;;  %1278 = vmatprep.subr.mxu1 %v607_v62 }
  0x3e   : > { %1248 = vmatpush3.msra.mxu0 %v1004_v42  ;;  %1279 = vmatpush3.msra.mxu1 %v607_v62 }
  0x3f   : > { %1249 = vmatprep.subr.mxu0 %v1003_v43  ;;  %1280 = vmatprep.subr.mxu1 %v606_v0 }
  0x40   : > { %1250 = vmatpush3.msra.mxu0 %v1003_v43  ;;  %1281 = vmatpush3.msra.mxu1 %v606_v0 }
  0x41   : > { %1251 = vmatprep.subr.mxu0 %v1002_v44  ;;  %1282 = vmatprep.subr.mxu1 %v605_v2 }
  0x42   : > { %1252 = vmatpush3.msra.mxu0 %v1002_v44  ;;  %1283 = vmatpush3.msra.mxu1 %v605_v2 }
  0x43   : > { %1253 = vmatprep.subr.mxu0 %v1001_v45  ;;  %1284 = vmatprep.subr.mxu1 %v604_v4 }
  0x44   : > { %1254 = vmatpush3.msra.mxu0 %v1001_v45  ;;  %1285 = vmatpush3.msra.mxu1 %v604_v4 }
  0x45   : > { %1255 = vmatprep.subr.mxu0 %v1000_v46  ;;  %1286 = vmatprep.subr.mxu1 %v603_v6 }
  0x46   : > { %1256 = vmatpush3.msra.mxu0 %v1000_v46  ;;  %1287 = vmatpush3.msra.mxu1 %v603_v6 }
  0x47   : > { %1257 = vmatprep.subr.mxu0 %v999_v47  ;;  %1288 = vmatprep.subr.mxu1 %v602_v8 }
  0x48   : > { %1258 = vmatpush3.msra.mxu0 %v999_v47  ;;  %1289 = vmatpush3.msra.mxu1 %v602_v8  ;;  %v1045_v47 = vld [vmem:[%s1779_s4 + $0x170] sm:$0xff] }
  0x49   : > { %1259 = vmatprep.subr.mxu0 %v998_v48  ;;  %1290 = vmatprep.subr.mxu1 %v601_v10 }
  0x4a   : > { %1260 = vmatpush3.msra.mxu0 %v998_v48  ;;  %1291 = vmatpush3.msra.mxu1 %v601_v10  ;;  %v1044_v48 = vld [vmem:[%s1779_s4 + $0x168] sm:$0xff] }
  0x4b   : > { %1261 = vmatprep.subr.mxu0 %v997_v49  ;;  %1292 = vmatprep.subr.mxu1 %v600_v12 }
  0x4c   : > { %1262 = vmatpush3.msra.mxu0 %v997_v49  ;;  %1293 = vmatpush3.msra.mxu1 %v600_v12  ;;  %v1043_v49 = vld [vmem:[%s1779_s4 + $0x160] sm:$0xff] }
  0x4d   : > { %1264 = vmatmul.mubr.f32.vlgmr.msra.gmra.mxu0 %v1546_v33  ;;  %1301 = vmatprep.subr.mxu0 %v1030_v51 }
  0x4e   : > { %1302 = vmatpush3.msra.mxu0 %v1030_v51  ;;  %1294 = vmatprep.subr.mxu1 %v599_v14  ;;  %v1041_v51 = vld [vmem:[%s1779_s4 + $0x150] sm:$0xff] }
  0x4f   : > { %1303 = vmatprep.subr.mxu0 %v1029_v53  ;;  %1295 = vmatpush3.msra.mxu1 %v599_v14 }
  0x50   : > { %1304 = vmatpush3.msra.mxu0 %v1029_v53  ;;  %1296 = vmatprep.subr.mxu1 %v598_v16  ;;  %v1039_v53 = vld [vmem:[%s1779_s4 + $0x140] sm:$0xff] }
  0x51   : > { %1305 = vmatprep.subr.mxu0 %v1028_v55  ;;  %1297 = vmatpush3.msra.mxu1 %v598_v16 }
  0x52   : > { %1306 = vmatpush3.msra.mxu0 %v1028_v55  ;;  %1336 = vmatprep.subr.mxu1 %v1046_v18  ;;  %v1037_v55 = vld [vmem:[%s1779_s4 + $0x130] sm:$0xff] }
  0x53   : > { %1307 = vmatprep.subr.mxu0 %v1027_v57 }
  0x54   : > { %1308 = vmatpush3.msra.mxu0 %v1027_v57  ;;  %v1035_v57 = vld [vmem:[%s1779_s4 + $0x120] sm:$0xff] }
  0x55   : > { %1309 = vmatprep.subr.mxu0 %v1026_v59 }
  0x56   : > { %1310 = vmatpush3.msra.mxu0 %v1026_v59  ;;  %v1033_v59 = vld [vmem:[%s1779_s4 + $0x110] sm:$0xff] }
  0x57   : > { %1311 = vmatprep.subr.mxu0 %v1025_v61 }
  0x58   : > { %1312 = vmatpush3.msra.mxu0 %v1025_v61  ;;  %v1031_v61 = vld [vmem:[%s1779_s4 + $0x100] sm:$0xff] }
  0x59   : > { %1313 = vmatprep.subr.mxu0 %v1024_v63 }
  0x5a   : > { %1314 = vmatpush3.msra.mxu0 %v1024_v63 }
  0x5b   : > { %1315 = vmatprep.subr.mxu0 %v1023_v1 }
  0x5c   : > { %1316 = vmatpush3.msra.mxu0 %v1023_v1 }
  0x5d   : > { %1317 = vmatprep.subr.mxu0 %v1022_v3 }
  0x5e   : > { %1318 = vmatpush3.msra.mxu0 %v1022_v3 }
  0x5f   : > { %1319 = vmatprep.subr.mxu0 %v1021_v5 }
  0x60   : > { %1320 = vmatpush3.msra.mxu0 %v1021_v5 }
  0x61   : > { %1321 = vmatprep.subr.mxu0 %v1020_v7 }
  0x62   : > { %1322 = vmatpush3.msra.mxu0 %v1020_v7 }
  0x63   : > { %1323 = vmatprep.subr.mxu0 %v1019_v9 }
  0x64   : > { %1324 = vmatpush3.msra.mxu0 %v1019_v9 }
  0x65   : > { %1325 = vmatprep.subr.mxu0 %v1018_v11 }
  0x66   : > { %1326 = vmatpush3.msra.mxu0 %v1018_v11  ;;  %v1047_v11 = vld [vmem:[%s1780_s5] ss:$0 sm:$0xff] }
  0x67   : > { %1327 = vmatprep.subr.mxu0 %v1017_v13 }
  0x68   : > { %1328 = vmatpush3.msra.mxu0 %v1017_v13 }
  0x69   : > { %1329 = vmatprep.subr.mxu0 %v1016_v15 }
  0x6a   : > { %1330 = vmatpush3.msra.mxu0 %v1016_v15  ;;  %v1048_v15 = vld [vmem:[%s1781_s6] ss:$0 sm:$0xff] }
  0x6b   : > { %1331 = vmatprep.subr.mxu0 %v1015_v17 }
  0x6c   : > { %1332 = vmatpush3.msra.mxu0 %v1015_v17 }
  0xec   : > { %v1195_v19 = vpop.f32.mrf.mxu0 }
  0xed   : > { %v560_v21 = vrot.slane %v1195_v19, 7 }
  0xee   : > { %v363_v20 = vpop.f32.mrf.mxu0 }
  0xef   : > { %v559_v22 = vrot.slane %v363_v20, 7  ;;  %v1230_v23 = vpop.f32.mrf.mxu1 }
  0xf1   : > { %v561_v24 = vsel %vm558_vm0, %v559_v22, %v560_v21  ;;  %v455_v26 = vpop.f32.mrf.mxu1  ;;  %v564_v27 = vsel %vm558_vm0, 0.0, %v559_v22 }
  0xf2   : > { %v575_v30 = vadd.f32 %v1230_v23, %v561_v24  ;;  %v574_v36 = vadd.f32 %v564_v27, %v455_v26 }
 0x10d   : > { %v1265_v25 = vpop.f32.mrf.mxu0 }
 0x10e   : > { %v569_v28 = vrot.slane %v1265_v25, 1 }
 0x10f   : > { %v547_v31 = vpop.f32.mrf.mxu0 }
 0x110   : > { %v573_v32 = vsel %vm567_vm1, %v569_v28, 0.0  ;;  %v568_v35 = vrot.slane %v547_v31, 1 }
 0x111   : > { %v577_v37 = vadd.f32 %v575_v30, %v573_v32 }
 0x112   : > { %v570_v38 = vsel %vm567_vm1, %v568_v35, %v569_v28 }
 0x113   : > { %v586_v39 = vmul.f32 %v1013_v34, %v577_v37  ;;  %v576_v40 = vadd.f32 %v574_v36, %v570_v38 }
 0x115   : > { %v585_v42 = vmul.f32 %v1013_v34, %v576_v40  ;;  %v595_v43 = vadd.f32 %v1014_v41, %v586_v39 }
 0x117   : > { %v594_v44 = vadd.f32 %v1014_v41, %v585_v42  ;;  %v597_v46 = vmax.f32 %v595_v43, 0.0 }
 0x119   : > { %v596_v45 = vmax.f32 %v594_v44, 0.0 }
 0x11b   : > { %1298 = vmatprep.mubr.f32.mxu1 %v596_v45  ;;  %1333 = vmatprep.mubr.f32.mxu0 %v596_v45 }
 0x11c   : > { %1299 = vmatmul.mubr.f32.vlgmr.msra.gmra.mxu1 %v597_v46  ;;  %1334 = vmatmul.mubr.f32.vlgmr.msra.gmra.mxu0 %v597_v46 }
 0x11d   : > { %1337 = vmatpush3.msra.mxu1 %v1046_v18  ;;  %1368 = vmatprep.mubr.f32.mxu1 %v596_v45 }
 0x11e   : > { %1338 = vmatprep.subr.mxu1 %v1045_v47 }
 0x11f   : > { %1339 = vmatpush3.msra.mxu1 %v1045_v47 }
 0x120   : > { %1340 = vmatprep.subr.mxu1 %v1044_v48 }
 0x121   : > { %1341 = vmatpush3.msra.mxu1 %v1044_v48 }
 0x122   : > { %1342 = vmatprep.subr.mxu1 %v1043_v49 }
 0x123   : > { %1343 = vmatpush3.msra.mxu1 %v1043_v49 }
 0x124   : > { %1344 = vmatprep.subr.mxu1 %v1042_v50 }
 0x125   : > { %1345 = vmatpush3.msra.mxu1 %v1042_v50 }
 0x126   : > { %1346 = vmatprep.subr.mxu1 %v1041_v51 }
 0x127   : > { %1347 = vmatpush3.msra.mxu1 %v1041_v51 }
 0x128   : > { %1348 = vmatprep.subr.mxu1 %v1040_v52 }
 0x129   : > { %1349 = vmatpush3.msra.mxu1 %v1040_v52 }
 0x12a   : > { %1350 = vmatprep.subr.mxu1 %v1039_v53 }
 0x12b   : > { %1351 = vmatpush3.msra.mxu1 %v1039_v53 }
 0x12c   : > { %1352 = vmatprep.subr.mxu1 %v1038_v54 }
 0x12d   : > { %1353 = vmatpush3.msra.mxu1 %v1038_v54 }
 0x12e   : > { %1354 = vmatprep.subr.mxu1 %v1037_v55 }
 0x12f   : > { %1355 = vmatpush3.msra.mxu1 %v1037_v55 }
 0x130   : > { %1356 = vmatprep.subr.mxu1 %v1036_v56 }
 0x131   : > { %1357 = vmatpush3.msra.mxu1 %v1036_v56 }
 0x132   : > { %1358 = vmatprep.subr.mxu1 %v1035_v57 }
 0x133   : > { %1359 = vmatpush3.msra.mxu1 %v1035_v57 }
 0x134   : > { %1360 = vmatprep.subr.mxu1 %v1034_v58 }
 0x135   : > { %1361 = vmatpush3.msra.mxu1 %v1034_v58 }
 0x136   : > { %1362 = vmatprep.subr.mxu1 %v1033_v59 }
 0x137   : > { %1363 = vmatpush3.msra.mxu1 %v1033_v59 }
 0x138   : > { %1364 = vmatprep.subr.mxu1 %v1032_v60 }
 0x139   : > { %1365 = vmatpush3.msra.mxu1 %v1032_v60 }
 0x13a   : > { %1366 = vmatprep.subr.mxu1 %v1031_v61 }
 0x13b   : > { %1367 = vmatpush3.msra.mxu1 %v1031_v61 }
 0x13c   : > { %1369 = vmatmul.mubr.f32.vlgmr.msra.gmra.mxu1 %v597_v46 }
 0x1dc   : > { %v1300_v62 = vpop.f32.mrf.mxu1  ;;  %v1335_v2 = vpop.f32.mrf.mxu0 }
 0x1dd   : > { %v876_v1 = vrot.slane %v1300_v62, 7 }
 0x1de   : > { %v680_v63 = vpop.f32.mrf.mxu1  ;;  %v772_v9 = vpop.f32.mrf.mxu0 }
 0x1df   : > { %v875_v0 = vrot.slane %v680_v63, 7 }
 0x1e1   : > { %v877_v3 = vsel %vm558_vm0, %v875_v0, %v876_v1  ;;  %v880_v5 = vsel %vm558_vm0, 0.0, %v875_v0 }
 0x1e2   : > { %v890_v7 = vadd.f32 %v1335_v2, %v877_v3  ;;  %v889_v13 = vadd.f32 %v880_v5, %v772_v9 }
 0x1fc   : > { %v1370_v4 = vpop.f32.mrf.mxu1 }
 0x1fd   : > { %v884_v6 = vrot.slane %v1370_v4, 1 }
 0x1fe   : > { %v864_v8 = vpop.f32.mrf.mxu1 }
 0x1ff   : > { %v888_v10 = vsel %vm567_vm1, %v884_v6, 0.0  ;;  %v883_v12 = vrot.slane %v864_v8, 1 }
 0x200   : > { %v892_v14 = vadd.f32 %v890_v7, %v888_v10 }
 0x201   : > { %v885_v16 = vsel %vm567_vm1, %v883_v12, %v884_v6 }
 0x202   : > { %v901_v17 = vmul.f32 %v1047_v11, %v892_v14  ;;  %v891_v18 = vadd.f32 %v889_v13, %v885_v16 }
 0x204   : > { %v910_v19 = vadd.f32 %v1048_v15, %v901_v17  ;;  %v900_v20 = vmul.f32 %v1047_v11, %v891_v18 }
 0x206   : > { %v912_v21 = vadd.f32 %v910_v19, %v1546_v33  ;;  %v909_v22 = vadd.f32 %v1048_v15, %v900_v20 }
 0x208   : > { %v914_v23 = vmax.f32 %v912_v21, 0.0  ;;  %v911_v24 = vadd.f32 %v909_v22, %v1534_v29 }
 0x20a   : > { %916 = vst [vmem:[%s278_s29 + $0x8] sm:$0xff] %v914_v23  ;;  %v913_v25 = vmax.f32 %v911_v24, 0.0 }
 0x20c   : > { %915 = vst [vmem:[%s278_s29] sm:$0xff] %v913_v25 }
 0x20d PF: > { %s17_s24 = sadd.s32 1, %s1385_s24  }
 0x20e   : > { %p14_p4 = scmp.ge.s32.totalorder %s17_s24, 4  }
 0x210   :  { %16 = sbr.rel (!%p14_p4) target bundleno = 1 (0x1), region = 82 }

</bundles_post_ra>
